<compile_context>
chip_gen: v7x
topology: tpu7x:2x2x1
jax: 0.10.0
libtpu: 0.0.40
codegen_flags: <defaults>
</compile_context>

<pallas_src>
import jax
import jax.numpy as jnp
from jax.experimental import pallas as pl
from jax.experimental.pallas import tpu as pltpu


_LAYER_DIMS = [(8, 8), (8, 8), (8, 4), (4, 2), (2, 1)]  # (fan_in, fan_out)


def _mlp_kernel(x_ref,
                w1_ref, b1_ref,
                w2_ref, b2_ref,
                w3_ref, b3_ref,
                w4_ref, b4_ref,
                w5_ref, b5_ref,
                o_ref):
    """Fused MLP forward on one [8, TB] batch tile (batch on lanes)."""
    h = x_ref[...]                                   # [8, TB] f32

    def dense(h, w_ref, b_ref, relu):
        # [out, in] @ [in, TB] -> [out, TB]; batch stays on the lane axis.
        y = jnp.dot(w_ref[...], h, preferred_element_type=jnp.float32)
        y = y + b_ref[...]                           # b is [out, 1], lane-broadcast
        return jnp.maximum(y, 0.0) if relu else y

    h = dense(h, w1_ref, b1_ref, True)
    h = dense(h, w2_ref, b2_ref, True)
    h = dense(h, w3_ref, b3_ref, True)
    h = dense(h, w4_ref, b4_ref, True)
    y = dense(h, w5_ref, b5_ref, False)              # [1, TB] lane-dense
    o_ref[...] = y.astype(o_ref.dtype)


def mlp_forward(x, params, *, batch_tile=1024):
    """x: [B, 8] float32. params: list of (W[out, in], b[out, 1]) per layer."""
    batch, feat = x.shape
    assert feat == _LAYER_DIMS[0][0]

    # Batch on the lane axis: the kernel sees x as [8, B].
    x_t = x.T

    # Lane tile: either the full batch (full-extent exemption for tiny/odd
    # batches) or a multiple of 128 so blocks are (8, 128*k)-aligned.
    tb = min(batch_tile, batch)
    if tb != batch:
        tb = max(128, (tb // 128) * 128)
    grid = (pl.cdiv(batch, tb),)

    flat_params = [p for wb in params for p in wb]

    x_spec = pl.BlockSpec((feat, tb), lambda i: (0, i))
    # Tiny weights/biases: full-extent blocks with a constant index map so
    # they stay VMEM-resident across all grid steps (no re-DMA).
    param_specs = [pl.BlockSpec(p.shape, lambda i: (0, 0)) for p in flat_params]
    out_spec = pl.BlockSpec((1, tb), lambda i: (0, i))

    out_t = pl.pallas_call(
        _mlp_kernel,
        out_shape=jax.ShapeDtypeStruct((1, batch), jnp.float32),
        grid=grid,
        in_specs=[x_spec] + param_specs,
        out_specs=out_spec,
        compiler_params=pltpu.CompilerParams(
            dimension_semantics=("parallel",)),      # dual-TC sharding on v7x
    )(x_t, *flat_params)

    # Back to the module's [B, 1] output layout (trivial wrapper-side plumbing).
    return out_t.T


def init_params(key):
    """Deterministic init matching nn.Linear: W is [out, in], b is [out, 1]."""
    params = []
    for (fan_in, fan_out) in _LAYER_DIMS:
        key, kw, kb = jax.random.split(key, 3)
        bound = 1.0 / jnp.sqrt(fan_in)
        w = jax.random.uniform(kw, (fan_out, fan_in), jnp.float32, -bound, bound)
        b = jax.random.uniform(kb, (fan_out, 1), jnp.float32, -bound, bound)
        params.append((w, b))
    return params


def reference_forward(x, params):
    """Pure-JAX reference of the PyTorch forward pass (ReLU after l1..l4)."""
    h = x
    for i, (w, b) in enumerate(params):
        h = h @ w.T + b[:, 0]
        if i < len(params) - 1:
            h = jnp.maximum(h, 0.0)
    return h


if __name__ == "__main__":
    key = jax.random.PRNGKey(0)
    params = init_params(key)

    # Small batch: single full-extent block (grid of 1).
    key, k1 = jax.random.split(key)
    x_small = jax.random.normal(k1, (8, 8), jnp.float32)
    out_small = jax.block_until_ready(mlp_forward(x_small, params))
    ref_small = reference_forward(x_small, params)
    assert out_small.shape == (8, 1), out_small.shape
    assert jnp.allclose(out_small, ref_small, atol=1e-5, rtol=1e-5)

    # Larger batch exercising the batch grid: two 128-lane tiles.
    key, k2 = jax.random.split(key)
    x_big = jax.random.normal(k2, (256, 8), jnp.float32)
    out_big = jax.block_until_ready(mlp_forward(x_big, params, batch_tile=128))
    ref_big = reference_forward(x_big, params)
    assert out_big.shape == (256, 1), out_big.shape
    assert jnp.allclose(out_big, ref_big, atol=1e-5, rtol=1e-5)

    print("KERNEL_OK")
</pallas_src>

<mosaic_0001>
module attributes {stable_mosaic.version = 11 : i64} {
  func.func @_mlp_kernel(%arg0: i32, %arg1: memref<8x8xf32, #tpu.memory_space<vmem>>, %arg2: memref<8x8xf32, #tpu.memory_space<vmem>>, %arg3: memref<8x1xf32, #tpu.memory_space<vmem>>, %arg4: memref<8x8xf32, #tpu.memory_space<vmem>>, %arg5: memref<8x1xf32, #tpu.memory_space<vmem>>, %arg6: memref<4x8xf32, #tpu.memory_space<vmem>>, %arg7: memref<4x1xf32, #tpu.memory_space<vmem>>, %arg8: memref<2x4xf32, #tpu.memory_space<vmem>>, %arg9: memref<2x1xf32, #tpu.memory_space<vmem>>, %arg10: memref<1x2xf32, #tpu.memory_space<vmem>>, %arg11: memref<1x1xf32, #tpu.memory_space<vmem>>, %arg12: memref<1x8xf32, #tpu.memory_space<vmem>>) attributes {dimension_semantics = [#tpu.dimension_semantics<parallel>], iteration_bounds = array<i64: 1>, scalar_prefetch = 0 : i64, scratch_operands = 0 : i64, tpu.core_type = #tpu.core_type<tc>, window_params = [{transform_indices = @transform_0, window_bounds = array<i64: 8, 8>}, {pipeline_mode = #tpu.pipeline_mode<synchronous>, transform_indices = @transform_1, window_bounds = array<i64: 8, 8>}, {pipeline_mode = #tpu.pipeline_mode<synchronous>, transform_indices = @transform_2, window_bounds = array<i64: 8, 1>}, {pipeline_mode = #tpu.pipeline_mode<synchronous>, transform_indices = @transform_3, window_bounds = array<i64: 8, 8>}, {pipeline_mode = #tpu.pipeline_mode<synchronous>, transform_indices = @transform_4, window_bounds = array<i64: 8, 1>}, {pipeline_mode = #tpu.pipeline_mode<synchronous>, transform_indices = @transform_5, window_bounds = array<i64: 4, 8>}, {pipeline_mode = #tpu.pipeline_mode<synchronous>, transform_indices = @transform_6, window_bounds = array<i64: 4, 1>}, {pipeline_mode = #tpu.pipeline_mode<synchronous>, transform_indices = @transform_7, window_bounds = array<i64: 2, 4>}, {pipeline_mode = #tpu.pipeline_mode<synchronous>, transform_indices = @transform_8, window_bounds = array<i64: 2, 1>}, {pipeline_mode = #tpu.pipeline_mode<synchronous>, transform_indices = @transform_9, window_bounds = array<i64: 1, 2>}, {pipeline_mode = #tpu.pipeline_mode<synchronous>, transform_indices = @transform_10, window_bounds = array<i64: 1, 1>}, {transform_indices = @transform_11, window_bounds = array<i64: 1, 8>}]} {
    %c0 = arith.constant 0 : index
    %c0_0 = arith.constant 0 : index
    %0 = vector.load %arg1[%c0, %c0_0] : memref<8x8xf32, #tpu.memory_space<vmem>>, vector<8x8xf32>
    %c0_1 = arith.constant 0 : index
    %c0_2 = arith.constant 0 : index
    %1 = vector.load %arg2[%c0_1, %c0_2] : memref<8x8xf32, #tpu.memory_space<vmem>>, vector<8x8xf32>
    %cst = arith.constant dense<0.000000e+00> : vector<8x8xf32>
    %2 = tpu.matmul %1, %0, %cst {dimension_numbers = #tpu.dot_dimension_numbers<[1], [0], [0], [1], [0, 0, 1, 1], [], []>} : vector<8x8xf32>, vector<8x8xf32>, vector<8x8xf32> -> vector<8x8xf32>
    %c0_3 = arith.constant 0 : index
    %c0_4 = arith.constant 0 : index
    %3 = vector.load %arg3[%c0_3, %c0_4] : memref<8x1xf32, #tpu.memory_space<vmem>>, vector<8x1xf32>
    %4 = vector.broadcast %3 : vector<8x1xf32> to vector<8x8xf32>
    %5 = arith.addf %2, %4 : vector<8x8xf32>
    %cst_5 = arith.constant 0.000000e+00 : f32
    %6 = vector.broadcast %cst_5 : f32 to vector<8x8xf32>
    %7 = arith.maximumf %5, %6 : vector<8x8xf32>
    %c0_6 = arith.constant 0 : index
    %c0_7 = arith.constant 0 : index
    %8 = vector.load %arg4[%c0_6, %c0_7] : memref<8x8xf32, #tpu.memory_space<vmem>>, vector<8x8xf32>
    %cst_8 = arith.constant dense<0.000000e+00> : vector<8x8xf32>
    %9 = tpu.matmul %8, %7, %cst_8 {dimension_numbers = #tpu.dot_dimension_numbers<[1], [0], [0], [1], [0, 0, 1, 1], [], []>} : vector<8x8xf32>, vector<8x8xf32>, vector<8x8xf32> -> vector<8x8xf32>
    %c0_9 = arith.constant 0 : index
    %c0_10 = arith.constant 0 : index
    %10 = vector.load %arg5[%c0_9, %c0_10] : memref<8x1xf32, #tpu.memory_space<vmem>>, vector<8x1xf32>
    %11 = vector.broadcast %10 : vector<8x1xf32> to vector<8x8xf32>
    %12 = arith.addf %9, %11 : vector<8x8xf32>
    %cst_11 = arith.constant 0.000000e+00 : f32
    %13 = vector.broadcast %cst_11 : f32 to vector<8x8xf32>
    %14 = arith.maximumf %12, %13 : vector<8x8xf32>
    %c0_12 = arith.constant 0 : index
    %c0_13 = arith.constant 0 : index
    %15 = vector.load %arg6[%c0_12, %c0_13] : memref<4x8xf32, #tpu.memory_space<vmem>>, vector<4x8xf32>
    %cst_14 = arith.constant dense<0.000000e+00> : vector<4x8xf32>
    %16 = tpu.matmul %15, %14, %cst_14 {dimension_numbers = #tpu.dot_dimension_numbers<[1], [0], [0], [1], [0, 0, 1, 1], [], []>} : vector<4x8xf32>, vector<8x8xf32>, vector<4x8xf32> -> vector<4x8xf32>
    %c0_15 = arith.constant 0 : index
    %c0_16 = arith.constant 0 : index
    %17 = vector.load %arg7[%c0_15, %c0_16] : memref<4x1xf32, #tpu.memory_space<vmem>>, vector<4x1xf32>
    %18 = vector.broadcast %17 : vector<4x1xf32> to vector<4x8xf32>
    %19 = arith.addf %16, %18 : vector<4x8xf32>
    %cst_17 = arith.constant 0.000000e+00 : f32
    %20 = vector.broadcast %cst_17 : f32 to vector<4x8xf32>
    %21 = arith.maximumf %19, %20 : vector<4x8xf32>
    %c0_18 = arith.constant 0 : index
    %c0_19 = arith.constant 0 : index
    %22 = vector.load %arg8[%c0_18, %c0_19] : memref<2x4xf32, #tpu.memory_space<vmem>>, vector<2x4xf32>
    %cst_20 = arith.constant dense<0.000000e+00> : vector<2x8xf32>
    %23 = tpu.matmul %22, %21, %cst_20 {dimension_numbers = #tpu.dot_dimension_numbers<[1], [0], [0], [1], [0, 0, 1, 1], [], []>} : vector<2x4xf32>, vector<4x8xf32>, vector<2x8xf32> -> vector<2x8xf32>
    %c0_21 = arith.constant 0 : index
    %c0_22 = arith.constant 0 : index
    %24 = vector.load %arg9[%c0_21, %c0_22] : memref<2x1xf32, #tpu.memory_space<vmem>>, vector<2x1xf32>
    %25 = vector.broadcast %24 : vector<2x1xf32> to vector<2x8xf32>
    %26 = arith.addf %23, %25 : vector<2x8xf32>
    %cst_23 = arith.constant 0.000000e+00 : f32
    %27 = vector.broadcast %cst_23 : f32 to vector<2x8xf32>
    %28 = arith.maximumf %26, %27 : vector<2x8xf32>
    %c0_24 = arith.constant 0 : index
    %c0_25 = arith.constant 0 : index
    %29 = vector.load %arg10[%c0_24, %c0_25] : memref<1x2xf32, #tpu.memory_space<vmem>>, vector<1x2xf32>
    %cst_26 = arith.constant dense<0.000000e+00> : vector<1x8xf32>
    %30 = tpu.matmul %29, %28, %cst_26 {dimension_numbers = #tpu.dot_dimension_numbers<[1], [0], [0], [1], [0, 0, 1, 1], [], []>} : vector<1x2xf32>, vector<2x8xf32>, vector<1x8xf32> -> vector<1x8xf32>
    %c0_27 = arith.constant 0 : index
    %c0_28 = arith.constant 0 : index
    %31 = vector.load %arg11[%c0_27, %c0_28] : memref<1x1xf32, #tpu.memory_space<vmem>>, vector<1x1xf32>
    %32 = vector.broadcast %31 : vector<1x1xf32> to vector<1x8xf32>
    %33 = arith.addf %30, %32 : vector<1x8xf32>
    %c0_29 = arith.constant 0 : index
    %c0_30 = arith.constant 0 : index
    %34 = vector.load %arg12[%c0_29, %c0_30] : memref<1x8xf32, #tpu.memory_space<vmem>>, vector<1x8xf32>
    tpu.vector_store %arg12[%c0_29, %c0_30], %33 {strides = array<i32>} : memref<1x8xf32, #tpu.memory_space<vmem>>, vector<1x8xf32>,
    return
  }
  func.func @transform_0(%arg0: i32) -> (i32, i32) {
    %c0_i32 = arith.constant 0 : i32
    %c0_i32_0 = arith.constant 0 : i32
    return %c0_i32, %arg0 : i32, i32
  }
  func.func @transform_1(%arg0: i32) -> (i32, i32) {
    %c0_i32 = arith.constant 0 : i32
    %c0_i32_0 = arith.constant 0 : i32
    %c0_i32_1 = arith.constant 0 : i32
    return %c0_i32, %c0_i32_0 : i32, i32
  }
  func.func @transform_2(%arg0: i32) -> (i32, i32) {
    %c0_i32 = arith.constant 0 : i32
    %c0_i32_0 = arith.constant 0 : i32
    %c0_i32_1 = arith.constant 0 : i32
    return %c0_i32, %c0_i32_0 : i32, i32
  }
  func.func @transform_3(%arg0: i32) -> (i32, i32) {
    %c0_i32 = arith.constant 0 : i32
    %c0_i32_0 = arith.constant 0 : i32
    %c0_i32_1 = arith.constant 0 : i32
    return %c0_i32, %c0_i32_0 : i32, i32
  }
  func.func @transform_4(%arg0: i32) -> (i32, i32) {
    %c0_i32 = arith.constant 0 : i32
    %c0_i32_0 = arith.constant 0 : i32
    %c0_i32_1 = arith.constant 0 : i32
    return %c0_i32, %c0_i32_0 : i32, i32
  }
  func.func @transform_5(%arg0: i32) -> (i32, i32) {
    %c0_i32 = arith.constant 0 : i32
    %c0_i32_0 = arith.constant 0 : i32
    %c0_i32_1 = arith.constant 0 : i32
    return %c0_i32, %c0_i32_0 : i32, i32
  }
  func.func @transform_6(%arg0: i32) -> (i32, i32) {
    %c0_i32 = arith.constant 0 : i32
    %c0_i32_0 = arith.constant 0 : i32
    %c0_i32_1 = arith.constant 0 : i32
    return %c0_i32, %c0_i32_0 : i32, i32
  }
  func.func @transform_7(%arg0: i32) -> (i32, i32) {
    %c0_i32 = arith.constant 0 : i32
    %c0_i32_0 = arith.constant 0 : i32
    %c0_i32_1 = arith.constant 0 : i32
    return %c0_i32, %c0_i32_0 : i32, i32
  }
  func.func @transform_8(%arg0: i32) -> (i32, i32) {
    %c0_i32 = arith.constant 0 : i32
    %c0_i32_0 = arith.constant 0 : i32
    %c0_i32_1 = arith.constant 0 : i32
    return %c0_i32, %c0_i32_0 : i32, i32
  }
  func.func @transform_9(%arg0: i32) -> (i32, i32) {
    %c0_i32 = arith.constant 0 : i32
    %c0_i32_0 = arith.constant 0 : i32
    %c0_i32_1 = arith.constant 0 : i32
    return %c0_i32, %c0_i32_0 : i32, i32
  }
  func.func @transform_10(%arg0: i32) -> (i32, i32) {
    %c0_i32 = arith.constant 0 : i32
    %c0_i32_0 = arith.constant 0 : i32
    %c0_i32_1 = arith.constant 0 : i32
    return %c0_i32, %c0_i32_0 : i32, i32
  }
  func.func @transform_11(%arg0: i32) -> (i32, i32) {
    %c0_i32 = arith.constant 0 : i32
    %c0_i32_0 = arith.constant 0 : i32
    return %c0_i32, %arg0 : i32, i32
  }
}

</mosaic_0001>

<bundles_post_ra>
// kernel: tpu_custom_call.1
= control target key start
LH: loop header
LB: loop body
LE: loop exit
PB: predicated region body
PF: predicated region fallthrough
CT: control target
= control target key end

     0   :  { %s666_s0 = inlined_call_operand.vmem [shape: f32[8,8], index: 0, kind: input, shape index: {}]   ;;  %s667_s1 = inlined_call_operand.vmem [shape: f32[8,8], index: 1, kind: input, shape index: {}]   ;;  %s668_s2 = inlined_call_operand.vmem [shape: f32[8,1], index: 2, kind: input, shape index: {}]   ;;  %s669_s3 = inlined_call_operand.vmem [shape: f32[8,8], index: 3, kind: input, shape index: {}]   ;;  %s670_s4 = inlined_call_operand.vmem [shape: f32[8,1], index: 4, kind: input, shape index: {}]   ;;  %s671_s5 = inlined_call_operand.vmem [shape: f32[4,8], index: 5, kind: input, shape index: {}]   ;;  %s672_s6 = inlined_call_operand.vmem [shape: f32[4,1], index: 6, kind: input, shape index: {}]   ;;  %s673_s7 = inlined_call_operand.vmem [shape: f32[2,4], index: 7, kind: input, shape index: {}]   ;;  %s674_s8 = inlined_call_operand.vmem [shape: f32[2,1], index: 8, kind: input, shape index: {}]   ;;  %s675_s9 = inlined_call_operand.vmem [shape: f32[1,2], index: 9, kind: input, shape index: {}]   ;;  %s676_s10 = inlined_call_operand.<no memory space> [shape: f32[1,1], index: 10, kind: input, shape index: {}]   ;;  %s677_s11 = inlined_call_operand.hbm [shape: f32[1,8], index: 11, kind: output, shape index: {}]  }
   0x1   :  { %v16_v0 = vstv %s676_s10 }
   0x2   :  { %17 = vst [vmem:[#allocation2] sm:$0x1] %v16_v0 }
   0x3   :  { %v41_v1 = vld [vmem:[%s666_s0] sm:$0xff]  ;;  %vm49_vm0 = vcmask 64512   ;;  %v549_v3 = vmov 0.0   ;;  %vm550_vm1 = vmmov 0   ;;  %v551_v5 = vmov 0  }
   0x4   :  { %v42_v2 = vld [vmem:[%s667_s1] sm:$0xff]  ;;  %494 = vmatprep.subr.mxu0 %v549_v3  ;;  %496 = vmatprep.mubr.msk.f32.mxu0 %vm550_vm1, %v549_v3 }
   0x5   :  { %v43_v4 = vld [vmem:[%s668_s2] sm:$0xff]  ;;  %495 = vmatpush3.msra.mxu0 %v41_v1  ;;  %523 = vset.pattern.permute.xlu0 %v551_v5 }
   0x6   :  { %18 = vsyncpa [#allocation4], 0  ;;  %497 = vmatmul.mubr.msk.f32.vlgmr.msra.gmra.mrb[0].mxu0 %vm49_vm0, %v42_v2  ;;  %46 = vperm.xlu0 %523, %v43_v4   ;;  %v125_v6 = vld [vmem:[%s670_s4] sm:$0xff]  ;;  %vm297_vm2 = vcmask 1043456   ;;  %vm293_vm3 = vcmask 31744   ;;  %vm387_vm4 = vcmask 1041408   ;;  %v379_v34 = vlaneseq }
   0x7   :  { %499 = vmatprep.subr.mxu1 %v549_v3  ;;  %501 = vmatprep.mubr.msk.f32.mxu1 %vm550_vm1, %v549_v3  ;;  %v124_v13 = vld [vmem:[%s669_s3] sm:$0xff]  ;;  %vm383_vm5 = vcmask 15360   ;;  %vm461_vm6 = vcmask 57344  }
   0x8   :  { %504 = vmatprep.subr.mxu0 %v549_v3  ;;  %506 = vmatprep.mubr.msk.f32.mxu0 %vm550_vm1, %v549_v3  ;;  %v206_v14 = vld [vmem:[%s672_s6] sm:$0xf]  ;;  %v380_v35 = vshrl.u32 %v379_v34, 7 }
   0x9   :  { %524 = vset.pattern.permute.xlu1 %v551_v5  ;;  %v373_v7 = vld [vmem:[#allocation2] sm:$0x1] }
   0xa   :  { %128 = vperm.xlu0 %523, %v125_v6   ;;  %209 = vperm.xlu1 %524, %v206_v14   ;;  %v287_v15 = vld [vmem:[%s674_s8] sm:$0x3]  ;;  %v381_v36 = vsub.s32 0, %v380_v35 }
   0xb   :  { %v205_v21 = vld [vmem:[%s671_s5] sm:$0xf] }
   0xc   :  { %v286_v27 = vld [vmem:[%s673_s7] sm:$0x3]  ;;  %s552_s7 = smov [#allocation3]  }
   0xd   :  { %v372_v33 = vld [vmem:[%s675_s9] sm:$0x1]  ;;  %s469_s30 = sshll.u32 %s552_s7, 4  ;;  %s470_s30 = int_to_ptr.vmem [resolvable:$true] %s469_s30 }
   0xe   :  { %376 = vperm.xlu0 %523, %v373_v7   ;;  %290 = vperm.xlu1 %524, %v287_v15   ;;  %s525_s12 = scalar_lea.vmem %s470_s30, 16  ;;  %s529_s13 = scalar_lea.vmem %s470_s30, 32 }
   0xf   :  { %p526_p0 = scmp.ne.s32.totalorder %s470_s30, %s525_s12  ;;  %p530_p1 = scmp.lt.s32.totalorder %s470_s30, %s470_s30 }
  0x10   :  { %p531_p2 = scmp.lt.s32.totalorder %s529_s13, %s525_s12 }
  0x12   :  { %p532_p3 = por %p531_p2, %p530_p1 }
  0x14   :  { %p533_p4 = pnand %p532_p3, %p526_p0 }
  0x85   :  { %v47_v8 = vpop.permute.xlu0 %46 }
  0x89   :  { %v129_v16 = vpop.permute.xlu0 %128  ;;  %v210_v22 = vpop.permute.xlu1 %209 }
  0x8d   :  { %v291_v28 = vpop.permute.xlu1 %290  ;;  %v377_v37 = vpop.permute.xlu0 %376 }
  0x8e   :  { %v382_v38 = vrot.slane %v377_v37, %v381_v36 }
  0xd9   :  { %v119_v9 = vpop.f32.mrb[0].mxu0 }
  0xda   :  { %v120_v10 = vadd.f32 %v119_v9, %v47_v8  ;;  %v498_v11 = vpop.f32.mrb[1].mxu0 }
  0xdc   :  { %v123_v12 = vmax.f32 %v120_v10, 0.0 }
  0xde   :  { %500 = vmatpush3.msra.mxu1 %v123_v12 }
  0xdf   :  { %502 = vmatmul.mubr.msk.f32.vlgmr.msra.gmra.mrb[0].mxu1 %vm49_vm0, %v124_v13  ;;  %509 = vmatprep.subr.mxu1 %v549_v3 }
  0xe0   :  { %511 = vmatprep.mubr.msk.f32.mxu1 %vm550_vm1, %v549_v3 }
 0x1b2   :  { %v200_v17 = vpop.f32.mrb[0].mxu1 }
 0x1b3   :  { %v201_v18 = vadd.f32 %v200_v17, %v129_v16  ;;  %v503_v19 = vpop.f32.mrb[1].mxu1 }
 0x1b5   :  { %v204_v20 = vmax.f32 %v201_v18, 0.0 }
 0x1b7   :  { %505 = vmatpush3.msra.mxu0 %v204_v20 }
 0x1b8   :  { %507 = vmatmul.mubr.msk.f32.vlgmr.msra.gmra.mrb[2].mxu0 %vm49_vm0, %v205_v21  ;;  %514 = vmatprep.subr.mxu0 %v549_v3 }
 0x1b9   :  { %516 = vmatprep.mubr.msk.f32.mxu0 %vm550_vm1, %v549_v3 }
 0x28b   :  { %v281_v23 = vpop.f32.mrb[2].mxu0 }
 0x28c   :  { %v282_v24 = vadd.f32 %v281_v23, %v210_v22  ;;  %v508_v25 = vpop.f32.mrb[3].mxu0 }
 0x28e   :  { %v285_v26 = vmax.f32 %v282_v24, 0.0 }
 0x290   :  { %510 = vmatpush3.msk.msra.mxu1 %vm297_vm2, %v285_v26 }
 0x291   :  { %512 = vmatmul.mubr.msk.f32.vlgmr.msra.gmra.mrb[2].mxu1 %vm293_vm3, %v286_v27 }
 0x364   :  { %v367_v29 = vpop.f32.mrb[2].mxu1 }
 0x365   :  { %v368_v30 = vadd.f32 %v367_v29, %v291_v28  ;;  %v513_v31 = vpop.f32.mrb[3].mxu1 }
 0x367   :  { %v371_v32 = vmax.f32 %v368_v30, 0.0 }
 0x369   :  { %515 = vmatpush3.msk.msra.mxu0 %vm387_vm4, %v371_v32 }
 0x36a   :  { %517 = vmatmul.mubr.msk.f32.vlgmr.msra.gmra.mrb[4].mxu0 %vm383_vm5, %v372_v33 }
 0x43d   :  { %v457_v39 = vpop.f32.mrb[4].mxu0 }
 0x43e   :  { %v458_v40 = vadd.f32 %v457_v39, %v382_v38  ;;  %v518_v41 = vpop.f32.mrb[5].mxu0 }
 0x440   :  { %462 = vst.msk [vmem:[#allocation3] sm:$0x1] %vm461_vm6, %v458_v40 }
 0x441   :  { %536 = shalt.err (!%p533_p4)
}
 0x442   :  { %s537_s15 = scalar_lea.hbm %s677_s11, 16 }
 0x443   :  { %p538_p5 = scmp.ne.s32.totalorder %s677_s11, %s537_s15  ;;  %p541_p6 = scmp.lt.u32.totalorder %s537_s15, %s677_s11 }
 0x445   :  { %p543_p7 = pnand %p541_p6, %p538_p5 }
 0x447   :  { %546 = shalt.err (!%p543_p7)
}
 0x448   :  { %472 = dma.vmem_to_hbm [thread:$0]  %s470_s30, 16, %s677_s11, [#allocation4]  }
 0x449   :  { %547 = dma.done.wait [#allocation4], 16  }
 0x44a   :  { %548 = vsyncadd [#allocation4], 4294967280 }
 0x44b   :  { %476 = vsyncpa [#allocation4], 1 }

</bundles_post_ra>
